<compile_context>
chip_gen: v7x
topology: tpu7x:2x2x1
jax: 0.10.0
libtpu: 0.0.40
codegen_flags: <defaults>
</compile_context>

<pallas_src>
import functools

import jax
import jax.numpy as jnp
from jax.experimental import pallas as pl
from jax.experimental.pallas import tpu as pltpu


def _round_up(x, m):
    return ((x + m - 1) // m) * m


def _cdiv(a, b):
    return (a + b - 1) // b


def _vmem_capacity_bytes():
    """Physical per-TensorCore VMEM, with a conservative fallback."""
    try:
        info = pltpu.get_tpu_info()
        cap = getattr(info, "vmem_capacity_bytes", None)
        if cap:
            return int(cap)
    except Exception:
        pass
    return 64 * 1024 * 1024  # conservative (v7x per-TC VMEM)


# ----------------------------------------------------------------------------
# Kernels
# ----------------------------------------------------------------------------
def _slab_kernel(x_ref, w_ref, b_ref, o_ref, m_sc, l_sc, *, tn):
    """Row-resident output slab variant.

    x_ref: (tm, d_model) bf16     w_ref: (d_model, tn) bf16
    b_ref: (1, tn) f32            o_ref: (tm, vocab_p) f32 (resident across j)
    m_sc / l_sc: (tm, 1) f32 online-logsumexp scratch.
    """
    j = pl.program_id(1)
    nj = pl.num_programs(1)

    @pl.when(j == 0)
    def _init():
        m_sc[...] = jnp.full_like(m_sc, -jnp.inf)
        l_sc[...] = jnp.zeros_like(l_sc)

    # MXU matmul, bf16 inputs, fp32 accumulation; bias added once per tile.
    logits = jnp.dot(x_ref[...], w_ref[...],
                     preferred_element_type=jnp.float32) + b_ref[...]

    # Online logsumexp update (all fp32).
    m_prev = m_sc[...]
    m_new = jnp.maximum(m_prev, jnp.max(logits, axis=-1, keepdims=True))
    l_sc[...] = l_sc[...] * jnp.exp(m_prev - m_new) + jnp.sum(
        jnp.exp(logits - m_new), axis=-1, keepdims=True)
    m_sc[...] = m_new

    # Stage raw logits into the row-resident output slab.
    col = pl.multiple_of(j * tn, tn)
    o_ref[:, pl.ds(col, tn)] = logits

    # Finalize: subtract the full-row logsumexp on the last vocab step.
    @pl.when(j == nj - 1)
    def _finalize():
        o_ref[...] = o_ref[...] - (m_sc[...] + jnp.log(l_sc[...]))


def _stream_kernel(x_ref, w_ref, b_ref, logits_ref, lse_ref, m_sc, l_sc):
    """Streamed-output variant: raw logits written per (i, j) tile plus a
    (tm, 1) logsumexp output; the subtraction happens outside the kernel.
    Keeps tm large when the fp32 resident slab would not fit VMEM."""
    j = pl.program_id(1)
    nj = pl.num_programs(1)

    @pl.when(j == 0)
    def _init():
        m_sc[...] = jnp.full_like(m_sc, -jnp.inf)
        l_sc[...] = jnp.zeros_like(l_sc)

    logits = jnp.dot(x_ref[...], w_ref[...],
                     preferred_element_type=jnp.float32) + b_ref[...]

    m_prev = m_sc[...]
    m_new = jnp.maximum(m_prev, jnp.max(logits, axis=-1, keepdims=True))
    l_sc[...] = l_sc[...] * jnp.exp(m_prev - m_new) + jnp.sum(
        jnp.exp(logits - m_new), axis=-1, keepdims=True)
    m_sc[...] = m_new

    logits_ref[...] = logits  # lane-dense full-tile store

    @pl.when(j == nj - 1)
    def _finalize():
        lse_ref[...] = m_sc[...] + jnp.log(l_sc[...])


# ----------------------------------------------------------------------------
# Jitted wrapper (weights already padded + bf16; only x is padded per call)
# ----------------------------------------------------------------------------
@functools.partial(
    jax.jit, static_argnames=("vocab", "tm", "tn", "use_slab", "vmem_limit"))
def _generator_forward_impl(x, w_bf16, b_f32, *, vocab, tm, tn, use_slab,
                            vmem_limit):
    batch, seq, d_model = x.shape
    vocab_p = w_bf16.shape[1]
    n = batch * seq
    n_p = _round_up(n, tm)

    x2d = x.reshape(n, d_model)
    if n_p != n:
        x2d = jnp.pad(x2d, ((0, n_p - n), (0, 0)))
    x2d = x2d.astype(jnp.bfloat16)

    grid = (n_p // tm, vocab_p // tn)

    # Advisory cost estimate (includes the finalize slab re-read in slab mode).
    out_bytes_per_elem = 12 if use_slab else 8
    cost = pl.CostEstimate(
        flops=2 * n_p * d_model * vocab_p,
        transcendentals=n_p * vocab_p,
        bytes_accessed=(n_p * d_model * 2
                        + grid[0] * (d_model * vocab_p * 2 + vocab_p * 4)
                        + n_p * vocab_p * out_bytes_per_elem),
    )

    in_specs = [
        pl.BlockSpec((tm, d_model), lambda i, j: (i, 0)),
        pl.BlockSpec((d_model, tn), lambda i, j: (0, j)),
        pl.BlockSpec((1, tn), lambda i, j: (0, j)),
    ]
    scratch = [pltpu.VMEM((tm, 1), jnp.float32),   # running max m
               pltpu.VMEM((tm, 1), jnp.float32)]   # running sum l
    cparams = pltpu.CompilerParams(
        dimension_semantics=("parallel", "arbitrary"),
        vmem_limit_bytes=vmem_limit,
    )

    if use_slab:
        out = pl.pallas_call(
            functools.partial(_slab_kernel, tn=tn),
            out_shape=jax.ShapeDtypeStruct((n_p, vocab_p), jnp.float32),
            grid_spec=pltpu.PrefetchScalarGridSpec(
                num_scalar_prefetch=0,
                grid=grid,
                in_specs=in_specs,
                out_specs=pl.BlockSpec((tm, vocab_p), lambda i, j: (i, 0)),
                scratch_shapes=scratch,
            ),
            compiler_params=cparams,
            cost_estimate=cost,
        )(x2d, w_bf16, b_f32)
    else:
        logits, lse = pl.pallas_call(
            _stream_kernel,
            out_shape=(jax.ShapeDtypeStruct((n_p, vocab_p), jnp.float32),
                       jax.ShapeDtypeStruct((n_p, 1), jnp.float32)),
            grid_spec=pltpu.PrefetchScalarGridSpec(
                num_scalar_prefetch=0,
                grid=grid,
                in_specs=in_specs,
                out_specs=[pl.BlockSpec((tm, tn), lambda i, j: (i, j)),
                           pl.BlockSpec((tm, 1), lambda i, j: (i, 0))],
                scratch_shapes=scratch,
            ),
            compiler_params=cparams,
            cost_estimate=cost,
        )(x2d, w_bf16, b_f32)
        out = logits - lse  # trailing fused XLA elementwise

    return out[:n, :vocab].reshape(batch, seq, vocab)


# ----------------------------------------------------------------------------
# Public module: prepares (pads + bf16-casts) the weight once, reuses it.
# ----------------------------------------------------------------------------
class PallasGenerator:
    """Pallas TPU generator head: log_softmax(x @ W + b)."""

    def __init__(self, w, b, *, tm_max=256, tn_max=None, force_stream=False):
        d_model, vocab = w.shape
        assert b.shape == (vocab,)
        self.d_model, self.vocab = d_model, vocab
        self.tm_max = tm_max
        self.force_stream = force_stream

        vmem_cap = _vmem_capacity_bytes()
        # Scoped limit with headroom below physical capacity (Mosaic scratch).
        self.vmem_limit = int(min(vmem_cap - 12 * 1024 * 1024,
                                  vmem_cap * 0.85))
        budget = int(self.vmem_limit * 0.9)

        if tn_max is None:
            # Wider vocab tiles (fewer grid steps) when VMEM is plentiful.
            tn_max = 4096 if vmem_cap >= 96 * 1024 * 1024 else 2048

        # --- vocab (lane) tiling: distribute vocab evenly over the fewest
        # tn_max-wide tiles; padding < 128 per tile instead of up to tn-1.
        vocab_p128 = _round_up(vocab, 128)
        nj = _cdiv(vocab_p128, tn_max)
        tn = _round_up(_cdiv(vocab_p128, nj), 128)
        vocab_p = nj * tn
        self.tn, self.vocab_p = tn, vocab_p

        # --- pad + cast weight/bias ONCE (cached across calls).
        w_p, b_p = w, b
        if vocab_p != vocab:
            w_p = jnp.pad(w, ((0, 0), (0, vocab_p - vocab)))
            # Large negative fp32 bias on padded columns -> exp underflows to
            # 0.  Bias stays fp32 on purpose (bf16 would round this to -inf).
            b_p = jnp.pad(b, (0, vocab_p - vocab), constant_values=-1e30)
        self.w_bf16 = jnp.asarray(w_p, jnp.bfloat16)
        self.b_f32 = jnp.asarray(b_p, jnp.float32).reshape(1, vocab_p)

        # --- largest row tile whose DOUBLE-BUFFERED fp32 output slab plus
        # double-buffered weight/x tiles and scratch fit the budget.
        fixed = (2 * d_model * tn * 2        # bf16 weight tiles (x2 buffers)
                 + 2 * tm_max * d_model * 2  # bf16 x tiles
                 + 2 * tn * 4                # fp32 bias tiles
                 + 4 * tm_max * 4)           # m/l scratch
        slab_tm = max(0, (budget - fixed) // (2 * vocab_p * 4))
        self.slab_tm = (slab_tm // 16) * 16  # bf16 sublane tile multiple

    def __call__(self, x):
        n = x.shape[0] * x.shape[1]
        # bf16 x blocks need sublane multiples of 16; don't over-pad tiny n.
        tm_cap = max(16, min(self.tm_max, _round_up(n, 16)))

        if self.force_stream:
            tm, use_slab = tm_cap, False
        elif self.slab_tm >= tm_cap:
            tm, use_slab = tm_cap, True
        elif self.slab_tm >= 128:
            tm, use_slab = 128, True
        else:
            # Resident slab would force tm < 128 (starves the MXU and
            # multiplies weight re-streaming): switch output strategy instead.
            tm, use_slab = tm_cap, False

        return _generator_forward_impl(
            x, self.w_bf16, self.b_f32,
            vocab=self.vocab, tm=tm, tn=self.tn,
            use_slab=use_slab, vmem_limit=self.vmem_limit)


def _reference(x, w, b):
    """Same math in plain JAX with the same bf16-input / fp32-accum contract."""
    batch, seq, d_model = x.shape
    vocab = w.shape[1]
    logits = jnp.dot(x.reshape(-1, d_model).astype(jnp.bfloat16),
                     w.astype(jnp.bfloat16),
                     preferred_element_type=jnp.float32) + b
    return jax.nn.log_softmax(logits, axis=-1).reshape(batch, seq, vocab)


if __name__ == "__main__":
    key = jax.random.PRNGKey(0)
    k1, k2, k3, k4, k5, k6 = jax.random.split(key, 6)

    # --- case 1: small shapes consistent with the module: Generator(d_model, vocab)
    batch, seq, d_model, vocab = 2, 8, 32, 128
    bound = 1.0 / (d_model ** 0.5)
    w = jax.random.uniform(k1, (d_model, vocab), jnp.float32, -bound, bound)
    b = jax.random.uniform(k2, (vocab,), jnp.float32, -bound, bound)
    x = jax.random.normal(k3, (batch, seq, d_model), jnp.float32)

    gen = PallasGenerator(w, b)                  # pads + bf16-casts weight once
    out = jax.block_until_ready(gen(x))
    ref = _reference(x, w, b)
    assert out.shape == (batch, seq, vocab)
    assert jnp.allclose(out, ref, atol=1e-3, rtol=1e-3)
    out_again = jax.block_until_ready(gen(x))    # reuses the cached bf16 weight
    assert jnp.allclose(out_again, ref, atol=1e-3, rtol=1e-3)

    # --- case 2: ragged vocab + multiple vocab tiles (resident-slab path)
    batch2, seq2, d2, vocab2 = 2, 5, 32, 200
    bound2 = 1.0 / (d2 ** 0.5)
    w2 = jax.random.uniform(k4, (d2, vocab2), jnp.float32, -bound2, bound2)
    b2 = jax.random.uniform(k5, (vocab2,), jnp.float32, -bound2, bound2)
    x2 = jax.random.normal(k6, (batch2, seq2, d2), jnp.float32)

    gen2 = PallasGenerator(w2, b2, tn_max=128)   # 2 vocab tiles of 128
    out2 = jax.block_until_ready(gen2(x2))
    ref2 = _reference(x2, w2, b2)
    assert out2.shape == (batch2, seq2, vocab2)
    assert jnp.allclose(out2, ref2, atol=1e-3, rtol=1e-3)

    # --- case 3: streamed logits + lse output path (used for very large vocab)
    gen3 = PallasGenerator(w2, b2, tn_max=128, force_stream=True)
    out3 = jax.block_until_ready(gen3(x2))
    assert jnp.allclose(out3, ref2, atol=1e-3, rtol=1e-3)

    print("KERNEL_OK")
</pallas_src>

<mosaic_0001>
module attributes {stable_mosaic.version = 11 : i64} {
  func.func @_slab_kernel(%arg0: i32, %arg1: i32, %arg2: memref<16x32xbf16, #tpu.memory_space<vmem>>, %arg3: memref<32x128xbf16, #tpu.memory_space<vmem>>, %arg4: memref<1x128xf32, #tpu.memory_space<vmem>>, %arg5: memref<16x128xf32, #tpu.memory_space<vmem>>, %arg6: memref<16x1xf32, #tpu.memory_space<vmem>>, %arg7: memref<16x1xf32, #tpu.memory_space<vmem>>) attributes {dimension_semantics = [#tpu.dimension_semantics<parallel>, #tpu.dimension_semantics<arbitrary>], iteration_bounds = array<i64: 1, 1>, scalar_prefetch = 0 : i64, scratch_operands = 2 : i64, tpu.core_type = #tpu.core_type<tc>, window_params = [{transform_indices = @transform_0, window_bounds = array<i64: 16, 32>}, {transform_indices = @transform_1, window_bounds = array<i64: 32, 128>}, {transform_indices = @transform_2, window_bounds = array<i64: 1, 128>}, {transform_indices = @transform_3, window_bounds = array<i64: 16, 128>}]} {
    %c0_i32 = arith.constant 0 : i32
    %0 = arith.cmpi eq, %arg1, %c0_i32 : i32
    %1 = arith.extui %0 : i1 to i32
    %c0_i32_0 = arith.constant 0 : i32
    %2 = arith.cmpi ne, %1, %c0_i32_0 : i32
    scf.if %2 {
      %cst_19 = arith.constant 0xFF800000 : f32
      %32 = vector.broadcast %cst_19 : f32 to vector<16x1xf32>
      %c0_20 = arith.constant 0 : index
      %c0_21 = arith.constant 0 : index
      %33 = vector.load %arg6[%c0_20, %c0_21] : memref<16x1xf32, #tpu.memory_space<vmem>>, vector<16x1xf32>
      tpu.vector_store %arg6[%c0_20, %c0_21], %32 {strides = array<i32>} : memref<16x1xf32, #tpu.memory_space<vmem>>, vector<16x1xf32>,
      %cst_22 = arith.constant 0.000000e+00 : f32
      %34 = vector.broadcast %cst_22 : f32 to vector<16x1xf32>
      %c0_23 = arith.constant 0 : index
      %c0_24 = arith.constant 0 : index
      %35 = vector.load %arg7[%c0_23, %c0_24] : memref<16x1xf32, #tpu.memory_space<vmem>>, vector<16x1xf32>
      tpu.vector_store %arg7[%c0_23, %c0_24], %34 {strides = array<i32>} : memref<16x1xf32, #tpu.memory_space<vmem>>, vector<16x1xf32>,
    } else {
    }
    %c0 = arith.constant 0 : index
    %c0_1 = arith.constant 0 : index
    %3 = vector.load %arg2[%c0, %c0_1] : memref<16x32xbf16, #tpu.memory_space<vmem>>, vector<16x32xbf16>
    %c0_2 = arith.constant 0 : index
    %c0_3 = arith.constant 0 : index
    %4 = vector.load %arg3[%c0_2, %c0_3] : memref<32x128xbf16, #tpu.memory_space<vmem>>, vector<32x128xbf16>
    %cst = arith.constant dense<0.000000e+00> : vector<16x128xf32>
    %5 = tpu.matmul %3, %4, %cst {dimension_numbers = #tpu.dot_dimension_numbers<[1], [0], [0], [1], [0, 0, 1, 1], [], []>} : vector<16x32xbf16>, vector<32x128xbf16>, vector<16x128xf32> -> vector<16x128xf32>
    %c0_4 = arith.constant 0 : index
    %c0_5 = arith.constant 0 : index
    %6 = vector.load %arg4[%c0_4, %c0_5] : memref<1x128xf32, #tpu.memory_space<vmem>>, vector<1x128xf32>
    %7 = vector.broadcast %6 : vector<1x128xf32> to vector<16x128xf32>
    %8 = arith.addf %5, %7 : vector<16x128xf32>
    %c0_6 = arith.constant 0 : index
    %c0_7 = arith.constant 0 : index
    %9 = vector.load %arg6[%c0_6, %c0_7] : memref<16x1xf32, #tpu.memory_space<vmem>>, vector<16x1xf32>
    %cst_8 = arith.constant dense<0xFF800000> : vector<16xf32>
    %10 = vector.multi_reduction <maximumf>, %8, %cst_8 [1] : vector<16x128xf32> to vector<16xf32>
    %11 = vector.shape_cast %10 : vector<16xf32> to vector<16x1xf32>
    %12 = arith.maximumf %9, %11 : vector<16x1xf32>
    %c0_9 = arith.constant 0 : index
    %c0_10 = arith.constant 0 : index
    %13 = vector.load %arg7[%c0_9, %c0_10] : memref<16x1xf32, #tpu.memory_space<vmem>>, vector<16x1xf32>
    %14 = arith.subf %9, %12 : vector<16x1xf32>
    %15 = math.exp %14 : vector<16x1xf32>
    %16 = arith.mulf %13, %15 : vector<16x1xf32>
    %17 = vector.broadcast %12 : vector<16x1xf32> to vector<16x128xf32>
    %18 = arith.subf %8, %17 : vector<16x128xf32>
    %19 = math.exp %18 : vector<16x128xf32>
    %cst_11 = arith.constant dense<0.000000e+00> : vector<16xf32>
    %20 = vector.multi_reduction <add>, %19, %cst_11 [1] : vector<16x128xf32> to vector<16xf32>
    %21 = vector.shape_cast %20 : vector<16xf32> to vector<16x1xf32>
    %22 = arith.addf %16, %21 : vector<16x1xf32>
    %c0_12 = arith.constant 0 : index
    %c0_13 = arith.constant 0 : index
    %23 = vector.load %arg7[%c0_12, %c0_13] : memref<16x1xf32, #tpu.memory_space<vmem>>, vector<16x1xf32>
    tpu.vector_store %arg7[%c0_12, %c0_13], %22 {strides = array<i32>} : memref<16x1xf32, #tpu.memory_space<vmem>>, vector<16x1xf32>,
    %c0_14 = arith.constant 0 : index
    %c0_15 = arith.constant 0 : index
    %24 = vector.load %arg6[%c0_14, %c0_15] : memref<16x1xf32, #tpu.memory_space<vmem>>, vector<16x1xf32>
    tpu.vector_store %arg6[%c0_14, %c0_15], %12 {strides = array<i32>} : memref<16x1xf32, #tpu.memory_space<vmem>>, vector<16x1xf32>,
    %c128_i32 = arith.constant 128 : i32
    %25 = arith.muli %arg1, %c128_i32 : i32
    %26 = tpu.assume_multiple %25, 128 : i32
    %c0_16 = arith.constant 0 : index
    %27 = arith.index_cast %26 : i32 to index
    %28 = vector.load %arg5[%c0_16, %27] : memref<16x128xf32, #tpu.memory_space<vmem>>, vector<16x128xf32>
    tpu.vector_store %arg5[%c0_16, %27], %8 {strides = array<i32>} : memref<16x128xf32, #tpu.memory_space<vmem>>, vector<16x128xf32>,
    %c0_i32_17 = arith.constant 0 : i32
    %29 = arith.cmpi eq, %arg1, %c0_i32_17 : i32
    %30 = arith.extui %29 : i1 to i32
    %c0_i32_18 = arith.constant 0 : i32
    %31 = arith.cmpi ne, %30, %c0_i32_18 : i32
    scf.if %31 {
      %c0_19 = arith.constant 0 : index
      %c0_20 = arith.constant 0 : index
      %32 = vector.load %arg5[%c0_19, %c0_20] : memref<16x128xf32, #tpu.memory_space<vmem>>, vector<16x128xf32>
      %c0_21 = arith.constant 0 : index
      %c0_22 = arith.constant 0 : index
      %33 = vector.load %arg6[%c0_21, %c0_22] : memref<16x1xf32, #tpu.memory_space<vmem>>, vector<16x1xf32>
      %c0_23 = arith.constant 0 : index
      %c0_24 = arith.constant 0 : index
      %34 = vector.load %arg7[%c0_23, %c0_24] : memref<16x1xf32, #tpu.memory_space<vmem>>, vector<16x1xf32>
      %35 = math.log %34 : vector<16x1xf32>
      %36 = arith.addf %33, %35 : vector<16x1xf32>
      %37 = vector.broadcast %36 : vector<16x1xf32> to vector<16x128xf32>
      %38 = arith.subf %32, %37 : vector<16x128xf32>
      %c0_25 = arith.constant 0 : index
      %c0_26 = arith.constant 0 : index
      %39 = vector.load %arg5[%c0_25, %c0_26] : memref<16x128xf32, #tpu.memory_space<vmem>>, vector<16x128xf32>
      tpu.vector_store %arg5[%c0_25, %c0_26], %38 {strides = array<i32>} : memref<16x128xf32, #tpu.memory_space<vmem>>, vector<16x128xf32>,
    } else {
    }
    return
  }
  func.func @transform_0(%arg0: i32, %arg1: i32) -> (i32, i32) {
    %c0_i32 = arith.constant 0 : i32
    %c0_i32_0 = arith.constant 0 : i32
    return %arg0, %c0_i32 : i32, i32
  }
  func.func @transform_1(%arg0: i32, %arg1: i32) -> (i32, i32) {
    %c0_i32 = arith.constant 0 : i32
    %c0_i32_0 = arith.constant 0 : i32
    return %c0_i32, %arg1 : i32, i32
  }
  func.func @transform_2(%arg0: i32, %arg1: i32) -> (i32, i32) {
    %c0_i32 = arith.constant 0 : i32
    %c0_i32_0 = arith.constant 0 : i32
    return %c0_i32, %arg1 : i32, i32
  }
  func.func @transform_3(%arg0: i32, %arg1: i32) -> (i32, i32) {
    %c0_i32 = arith.constant 0 : i32
    %c0_i32_0 = arith.constant 0 : i32
    return %arg0, %c0_i32 : i32, i32
  }
}

</mosaic_0001>

<bundles_post_ra>
// kernel: _generator_forward_impl.1
= control target key start
LH: loop header
LB: loop body
LE: loop exit
PB: predicated region body
PF: predicated region fallthrough
CT: control target
= control target key end

     0   :  { %v261_v1 = vmov 0.0   ;;  %vm262_vm0 = vmmov 0   ;;  %s330_s0 = inlined_call_operand.vmem [shape: bf16[16,32], index: 0, kind: input, shape index: {}]   ;;  %s331_s1 = inlined_call_operand.vmem [shape: bf16[32,128], index: 1, kind: input, shape index: {}]   ;;  %s332_s2 = inlined_call_operand.vmem [shape: f32[1,128], index: 2, kind: input, shape index: {}]   ;;  %s333_s3 = inlined_call_operand.hbm [shape: f32[16,128], index: 3, kind: output, shape index: {}]  }
   0x1   :  { %v222_v0 = vld [vmem:[%s331_s1] sm:$0xff]   ;;  %205 = vmatprep.subr.bf16.mxu0 %v261_v1  ;;  %v223_v2 = vld [vmem:[%s331_s1 + $0x8] sm:$0xff]   ;;  %209 = vmatprep.mubr.msk.bf16.mxu0 %vm262_vm0, %v261_v1 }
   0x2   :  { %206 = vmatpush3.bf16.msra.mxu0 %v222_v0 }
   0x3   :  { %207 = vmatprep.subr.bf16.mxu0 %v261_v1 }
   0x4   :  { %8 = vsyncpa [#allocation5], 0  ;;  %v224_v3 = vld [vmem:[%s330_s0] sm:$0xff]   ;;  %vm55_vm1 = vcmask 261120   ;;  %vm20_vm2 = vcmask 7168   ;;  %v263_v11 = vmov -inf  }
   0x5   :  { %v197_v4 = vld [vmem:[%s332_s2] ss:$0 sm:$0xff]  ;;  %21 = vst.msk [vmem:[#allocation2] sm:$0xff] %vm20_vm2, %v263_v11  ;;  %22 = vst.msk [vmem:[#allocation2 + $0x8] sm:$0xff] %vm20_vm2, %v263_v11  ;;  %v264_v12 = vmov 0   ;;  %s265_s0 = smov [#allocation4]  }
   0x6   :  { %208 = vmatpush3.bf16.msra.mxu0 %v223_v2  ;;  %23 = vst.msk [vmem:[#allocation3] sm:$0xff] %vm20_vm2, %v261_v1  ;;  %24 = vst.msk [vmem:[#allocation3 + $0x8] sm:$0xff] %vm20_vm2, %v261_v1  ;;  %220 = vset.pattern.permute.xlu1 %v264_v12  ;;  %s185_s1 = sshll.u32 %s265_s0, 4  ;;  %s186_s1 = int_to_ptr.vmem [resolvable:$true] %s185_s1 }
   0x7   :  { %221 = vset.pattern.permute.xlu0 %v264_v12  ;;  %s237_s2 = scalar_lea.vmem %s186_s1, 256  ;;  %p242_p1 = scmp.lt.s32.totalorder %s186_s1, %s186_s1 }
   0x8   :  { %p238_p0 = scmp.ne.s32.totalorder %s186_s1, %s237_s2  ;;  %p243_p2 = scmp.lt.s32.totalorder %s237_s2, %s237_s2 }
   0x9   :  { %210 = vmatmul.mubr.msk.bf16.vlgmr.msra.gmra.mrb[0].mxu0 %vm55_vm1, %v224_v3 }
   0xa   :  { %p244_p3 = por %p243_p2, %p242_p1 }
   0xc   :  { %v100_v13 = vld [vmem:[#allocation2] sm:$0xff]  ;;  %v101_v16 = vld [vmem:[#allocation2 + $0x8] sm:$0xff]  ;;  %p245_p4 = pnand %p244_p3, %p238_p0 }
   0xd   :  { %v108_v32 = vld [vmem:[#allocation3] sm:$0xff]  ;;  %v109_v36 = vld [vmem:[#allocation3 + $0x8] sm:$0xff] }
  0xdc   :  { %v93_v5 = vpop.f32.mrb[0].mxu0 }
  0xdd   :  { %v300_v6 = vadd.f32 %v197_v4, %v93_v5  ;;  %v211_v7 = vpop.f32.mrb[1].mxu0 }
  0xde   :  { %v96_v8 = vpop.f32.mrb[2].mxu0 }
  0xdf   :  { %102 = vmax.xlane.f32.xlu0 %v300_v6  ;;  %v212_v9 = vpop.f32.mrb[3].mxu0  ;;  %v303_v10 = vadd.f32 %v197_v4, %v96_v8 }
  0xe3   :  { %104 = vmax.xlane.f32.xlu0 %v303_v10 }
 0x16c   :  { %v103_v14 = vpop.xlane.xlu0 %102 }
 0x16d   :  { %v106_v15 = vmax.f32 %v100_v13, %v103_v14 }
 0x16f   :  { %v110_v17 = vsub.f32 %v100_v13, %v106_v15  ;;  %143 = vst.msk [vmem:[#allocation2] sm:$0xff] %vm20_vm2, %v106_v15  ;;  %120 = vperm.xlu1 %220, %v106_v15  }
 0x170   :  { %v105_v18 = vpop.xlane.xlu0 %104 }
 0x171   :  { %v107_v19 = vmax.f32 %v101_v16, %v105_v18  ;;  %v112_v29 = vmul.f32 1.442695, %v110_v17 }
 0x173   :  { %v111_v20 = vsub.f32 %v101_v16, %v107_v19  ;;  %144 = vst.msk [vmem:[#allocation2 + $0x8] sm:$0xff] %vm20_vm2, %v107_v19  ;;  %125 = vperm.xlu1 %220, %v107_v19  }
 0x175   :  { %v114_v30 = vmul.f32 1.442695, %v111_v20 }
 0x176   :  { %v156_v45 = vld [vmem:[#allocation2] sm:$0xff] }
 0x17a   :  { %v157_v49 = vld [vmem:[#allocation2 + $0x8] sm:$0xff] }
 0x1ee   :  { %v121_v21 = vpop.permute.xlu1 %120 }
 0x1ef   :  { %v128_v22 = vsub.f32 %v300_v6, %v121_v21 }
 0x1f1   :  { %v130_v23 = vmul.f32 1.442695, %v128_v22 }
 0x1f2   :  { %v126_v24 = vpop.permute.xlu1 %125 }
 0x1f3   :  { %225 = vpow2.f32 %v130_v23  ;;  %v129_v25 = vsub.f32 %v303_v10, %v126_v24 }
 0x1f5   :  { %v132_v26 = vmul.f32 1.442695, %v129_v25 }
 0x1f7   :  { %227 = vpow2.f32 %v132_v26 }
 0x1f8   :  { %229 = vpow2.f32 %v112_v29 }
 0x1f9   :  { %231 = vpow2.f32 %v114_v30 }
 0x1fd   :  { %v226_v27 = vpop.eup %225 }
 0x1fe   :  { %134 = vadd.xlane.f32.xlu0 %v226_v27 }
 0x201   :  { %v228_v28 = vpop.eup %227 }
 0x202   :  { %136 = vadd.xlane.f32.xlu1 %v228_v28  ;;  %v230_v31 = vpop.eup %229 }
 0x203   :  { %v116_v33 = vmul.f32 %v230_v31, %v108_v32  ;;  %v232_v34 = vpop.eup %231 }
 0x204   :  { %v117_v38 = vmul.f32 %v232_v34, %v109_v36 }
 0x28b   :  { %v135_v35 = vpop.xlane.xlu0 %134 }
 0x28c   :  { %v138_v37 = vadd.f32 %v135_v35, %v116_v33 }
 0x28e   :  { %141 = vst.msk [vmem:[#allocation3] sm:$0xff] %vm20_vm2, %v138_v37 }
 0x28f   :  { %v137_v39 = vpop.xlane.xlu1 %136 }
 0x290   :  { %v139_v40 = vadd.f32 %v137_v39, %v117_v38 }
 0x292   :  { %142 = vst.msk [vmem:[#allocation3 + $0x8] sm:$0xff] %vm20_vm2, %v139_v40 }
 0x295   :  { %v158_v41 = vld [vmem:[#allocation3] sm:$0xff] }
 0x296   :  { %233 = vlog2.f32 %v158_v41 }
 0x299   :  { %v159_v42 = vld [vmem:[#allocation3 + $0x8] sm:$0xff] }
 0x29a   :  { %235 = vlog2.f32 %v159_v42 }
 0x2a0   :  { %v234_v43 = vpop.eup %233 }
 0x2a1   :  { %v161_v44 = vmul.f32 0.6931472, %v234_v43 }
 0x2a3   :  { %v164_v46 = vadd.f32 %v161_v44, %v156_v45 }
 0x2a4   :  { %v236_v47 = vpop.eup %235 }
 0x2a5   :  { %168 = vperm.xlu0 %221, %v164_v46   ;;  %v163_v48 = vmul.f32 0.6931472, %v236_v47 }
 0x2a7   :  { %v165_v50 = vadd.f32 %v163_v48, %v157_v49 }
 0x2a9   :  { %173 = vperm.xlu1 %220, %v165_v50  }
 0x324   :  { %v169_v51 = vpop.permute.xlu0 %168 }
 0x325   :  { %v176_v52 = vsub.f32 %v300_v6, %v169_v51 }
 0x327   :  { %178 = vst [vmem:[#allocation4] sm:$0xff] %v176_v52 }
 0x328   :  { %v174_v53 = vpop.permute.xlu1 %173 }
 0x329   :  { %v177_v54 = vsub.f32 %v303_v10, %v174_v53 }
 0x32b   :  { %179 = vst [vmem:[#allocation4 + $0x8] sm:$0xff] %v177_v54 }
 0x32c   :  { %248 = shalt.err (!%p245_p4)
}
 0x32d   :  { %s249_s22 = scalar_lea.hbm %s333_s3, 256 }
 0x32e   :  { %p250_p5 = scmp.ne.s32.totalorder %s333_s3, %s249_s22  ;;  %p253_p6 = scmp.lt.u32.totalorder %s249_s22, %s333_s3 }
 0x330   :  { %p255_p7 = pnand %p253_p6, %p250_p5 }
 0x332   :  { %258 = shalt.err (!%p255_p7)
}
 0x333   :  { %s266_s27 = smov 128   ;;  %s267_s28 = smov 8  }
 0x334   :  { %191 = dma.vmem_to_hbm [thread:$0]  %s186_s1, 256, %s333_s3, [#allocation5], %s266_s27, %s266_s27, %s267_s28  }
 0x335   :  { %259 = dma.done.wait [#allocation5], 256  }
 0x336   :  { %260 = vsyncadd [#allocation5], 4294967040 }
 0x337   :  { %195 = vsyncpa [#allocation5], 1 }

</bundles_post_ra>
